<compile_context>
chip_gen: v7x
topology: tpu7x:2x2x1
jax: 0.10.0
libtpu: 0.0.40
codegen_flags: <defaults>
</compile_context>

<pallas_src>
import functools

import jax
import jax.numpy as jnp
from jax import lax
from jax.experimental import pallas as pl
from jax.experimental.pallas import tpu as pltpu

_I32_MIN = -(2 ** 31)             # "already selected" / padding sentinel
_SUBLANE = {1: 32, 2: 16, 4: 8}   # minimum sublane tile per itemsize


def _round_up(a: int, m: int) -> int:
    return ((a + m - 1) // m) * m


def _ordered_key(xf):
    """Monotone map float32 -> int32: a < b  <=>  key(a) < key(b).

    -inf maps to a finite int32 well above _I32_MIN, so the sentinel never
    collides with a real value.  Positive NaNs rank above +inf (torch.topk's
    "NaN is largest"); negative NaNs rank below -inf.
    """
    b = pltpu.bitcast(xf, jnp.int32)
    return jnp.where(b >= 0, b, b ^ jnp.int32(0x7FFFFFFF))


def _topk_sparsity_kernel(x_ref, y_ref, *, k: int, f_valid: int, col_bits: int):
    x = x_ref[...]
    tb, f_blk = x.shape
    key = _ordered_key(x.astype(jnp.float32))
    col = lax.broadcasted_iota(jnp.int32, (tb, f_blk), 1)

    if col_bits:
        # bf16/f16 path: the value occupies only the top (32 - col_bits) key
        # bits, so pack the reversed column index into the free low bits.
        # Keys become unique per row -> one cross-lane max per selected
        # element; equal values resolve to the lowest column, as below.
        key = (key & jnp.int32(-(1 << col_bits))) | (jnp.int32(f_blk - 1) - col)

    if f_valid != f_blk:
        # Lanes >= f_valid are block padding (undefined data read out of
        # bounds): force their keys to the sentinel so they can never win a
        # round; the corresponding output lanes are dropped on writeback.
        key = jnp.where(col < f_valid, key, jnp.int32(_I32_MIN))

    if col_bits:
        def body(_, cur):
            row_max = jnp.max(cur, axis=-1, keepdims=True)
            return jnp.where(cur == row_max, jnp.int32(_I32_MIN), cur)
    else:
        # Exact float32 ranking: one max (value) + one min (first tied column).
        def body(_, cur):
            row_max = jnp.max(cur, axis=-1, keepdims=True)
            cand = jnp.where(cur == row_max, col, jnp.int32(f_blk))
            first = jnp.min(cand, axis=-1, keepdims=True)
            return jnp.where(col == first, jnp.int32(_I32_MIN), cur)

    # Knock each round's winner down to the sentinel; carry only `cur`.
    unroll = True if k <= 8 else 4
    cur = lax.fori_loop(0, k, body, key, unroll=unroll)

    sel = cur != key              # exactly the k positions knocked out above
    y_ref[...] = jnp.where(sel, x, jnp.zeros_like(x))


def topk_sparsity(x: jax.Array, topk: int = 1, *, batch_tile=None) -> jax.Array:
    """Forward pass of TopKSparsity: keep the top-k per row (last axis), zero the rest."""
    assert x.ndim == 2, "TopKSparsity expects a 2-D input (B, F)"
    b, f = x.shape
    assert 1 <= topk <= f

    itemsize = jnp.dtype(x.dtype).itemsize
    sub = _SUBLANE.get(itemsize, 8)

    # Lane-dense block: the whole (padded-to-128) feature row lives in one block.
    f_blk = _round_up(f, 128)

    if batch_tile is None:
        # ~1 MiB input block: amortizes pipeline overhead (~85% of HBM BW on a
        # pure stream) while keeping double-buffered in/out blocks plus the
        # int32 key temporaries well inside the 32 MiB scoped-VMEM limit on
        # every generation (v5e/v6e/v7x).
        target_bytes = 1 << 20
        bt = max(sub, (target_bytes // (f_blk * itemsize)) // sub * sub)
        b_ceil = _round_up(b, sub)
        if bt >= b_ceil and b_ceil > sub:
            # keep >= 2 grid steps where possible so the 'parallel' axis can be
            # split across the two TensorCores on v7x.
            bt = _round_up(pl.cdiv(b_ceil, 2), sub)
        batch_tile = min(bt, b_ceil)
    assert batch_tile % sub == 0, "batch_tile must be a multiple of the sublane tile"

    # Sub-32-bit floats are exactly ranked by their high key bits -> fuse value
    # ranking and column tie-break into one packed key (single reduction/round).
    if x.dtype == jnp.bfloat16:
        col_bits = 16
    elif x.dtype == jnp.float16:
        col_bits = 13
    else:
        col_bits = 0
    if col_bits and f_blk > (1 << col_bits):
        col_bits = 0

    kernel = functools.partial(
        _topk_sparsity_kernel, k=topk, f_valid=f, col_bits=col_bits)

    return pl.pallas_call(
        kernel,
        out_shape=jax.ShapeDtypeStruct((b, f), x.dtype),
        grid_spec=pltpu.PrefetchScalarGridSpec(
            num_scalar_prefetch=0,
            grid=(pl.cdiv(b, batch_tile),),
            in_specs=[pl.BlockSpec((batch_tile, f_blk), lambda i: (i, 0))],
            out_specs=pl.BlockSpec((batch_tile, f_blk), lambda i: (i, 0)),
        ),
        compiler_params=pltpu.CompilerParams(
            dimension_semantics=("parallel",),
            vmem_limit_bytes=32 * 1024 * 1024,
        ),
        cost_estimate=pl.CostEstimate(
            flops=2 * topk * b * f_blk,
            transcendentals=0,
            bytes_accessed=2 * b * f * itemsize,
        ),
    )(x)


def _reference_topk_sparsity(x: jnp.ndarray, k: int) -> jnp.ndarray:
    # Pure-JAX reference mirroring the PyTorch semantics.
    _, idx = lax.top_k(x, k)
    mask = jnp.zeros(x.shape, dtype=bool)
    mask = jax.vmap(lambda m, i: m.at[i].set(True))(mask, idx)
    return jnp.where(mask, x, jnp.zeros_like(x))


if __name__ == "__main__":
    key0 = jax.random.PRNGKey(0)
    k1, k2, k3 = jax.random.split(key0, 3)

    # --- float32, ragged F (not a 128 multiple): exact two-reduction path ---
    B, F, TOPK = 16, 96, 4
    x = jax.random.normal(k1, (B, F), dtype=jnp.float32)
    y = jax.block_until_ready(topk_sparsity(x, topk=TOPK))
    assert y.shape == x.shape and y.dtype == x.dtype
    assert jnp.array_equal(y, _reference_topk_sparsity(x, TOPK)), "f32 mismatch"
    assert bool(jnp.all(jnp.sum(y != 0, axis=-1) == TOPK))

    # --- float32, lane-aligned F, k = 1 ---
    x1 = jax.random.normal(k2, (8, 256), dtype=jnp.float32)
    y1 = jax.block_until_ready(topk_sparsity(x1, topk=1))
    assert jnp.array_equal(y1, _reference_topk_sparsity(x1, 1)), "f32 k=1 mismatch"

    # --- bfloat16: fused packed-key path, ragged F + partial last batch block ---
    B2, F2, TOPK2 = 24, 200, 3
    xb = jax.random.normal(k3, (B2, F2), dtype=jnp.float32).astype(jnp.bfloat16)
    yb = jax.block_until_ready(topk_sparsity(xb, topk=TOPK2))
    assert yb.shape == xb.shape and yb.dtype == xb.dtype
    keep = yb != 0
    # kept entries carry the original values, everything else is zero
    assert bool(jnp.all((yb == 0) | (yb == xb)))
    # exactly k kept per row
    assert bool(jnp.all(jnp.sum(keep, axis=-1) == TOPK2))
    # tie-robust top-k check: every kept value >= every dropped value, per row
    xf = xb.astype(jnp.float32)
    min_kept = jnp.min(jnp.where(keep, xf, jnp.inf), axis=-1)
    max_drop = jnp.max(jnp.where(keep, -jnp.inf, xf), axis=-1)
    assert bool(jnp.all(min_kept >= max_drop))

    print("KERNEL_OK")
</pallas_src>

<mosaic_0001>
module attributes {stable_mosaic.version = 11 : i64} {
  func.func @_topk_sparsity_kernel(%arg0: i32, %arg1: memref<8x128xf32, #tpu.memory_space<vmem>>, %arg2: memref<8x128xf32, #tpu.memory_space<vmem>>) attributes {dimension_semantics = [#tpu.dimension_semantics<parallel>], iteration_bounds = array<i64: 2>, scalar_prefetch = 0 : i64, scratch_operands = 0 : i64, tpu.core_type = #tpu.core_type<tc>, window_params = [{transform_indices = @transform_0, window_bounds = array<i64: 8, 128>}, {transform_indices = @transform_1, window_bounds = array<i64: 8, 128>}]} {
    %c0 = arith.constant 0 : index
    %c0_0 = arith.constant 0 : index
    %0 = vector.load %arg1[%c0, %c0_0] : memref<8x128xf32, #tpu.memory_space<vmem>>, vector<8x128xf32>
    %1 = tpu.bitcast %0 : vector<8x128xf32> -> vector<8x128xi32>
    %c0_i32 = arith.constant 0 : i32
    %2 = vector.broadcast %c0_i32 : i32 to vector<8x128xi32>
    %3 = arith.cmpi sge, %1, %2 : vector<8x128xi32>
    %c2147483647_i32 = arith.constant 2147483647 : i32
    %4 = vector.broadcast %c2147483647_i32 : i32 to vector<8x128xi32>
    %5 = arith.xori %1, %4 : vector<8x128xi32>
    %6 = arith.select %3, %1, %5 : vector<8x128xi1>, vector<8x128xi32>
    %7 = tpu.iota {dimensions = array<i32: 1>} : vector<8x128xi32>
    %c96_i32 = arith.constant 96 : i32
    %8 = vector.broadcast %c96_i32 : i32 to vector<8x128xi32>
    %9 = arith.cmpi slt, %7, %8 : vector<8x128xi32>
    %c-2147483648_i32 = arith.constant -2147483648 : i32
    %10 = vector.broadcast %c-2147483648_i32 : i32 to vector<8x128xi32>
    %11 = arith.select %9, %6, %10 : vector<8x128xi1>, vector<8x128xi32>
    %c0_i32_1 = arith.constant 0 : i32
    %cst = arith.constant dense<-2147483648> : vector<8xi32>
    %12 = vector.multi_reduction <maxsi>, %11, %cst [1] : vector<8x128xi32> to vector<8xi32>
    %13 = vector.shape_cast %12 : vector<8xi32> to vector<8x1xi32>
    %14 = vector.broadcast %13 : vector<8x1xi32> to vector<8x128xi32>
    %15 = arith.cmpi eq, %11, %14 : vector<8x128xi32>
    %c128_i32 = arith.constant 128 : i32
    %16 = vector.broadcast %c128_i32 : i32 to vector<8x128xi32>
    %17 = arith.select %15, %7, %16 : vector<8x128xi1>, vector<8x128xi32>
    %cst_2 = arith.constant dense<2147483647> : vector<8xi32>
    %18 = vector.multi_reduction <minsi>, %17, %cst_2 [1] : vector<8x128xi32> to vector<8xi32>
    %19 = vector.shape_cast %18 : vector<8xi32> to vector<8x1xi32>
    %20 = vector.broadcast %19 : vector<8x1xi32> to vector<8x128xi32>
    %21 = arith.cmpi eq, %7, %20 : vector<8x128xi32>
    %c-2147483648_i32_3 = arith.constant -2147483648 : i32
    %22 = vector.broadcast %c-2147483648_i32_3 : i32 to vector<8x128xi32>
    %23 = arith.select %21, %22, %11 : vector<8x128xi1>, vector<8x128xi32>
    %c1_i32 = arith.constant 1 : i32
    %cst_4 = arith.constant dense<-2147483648> : vector<8xi32>
    %24 = vector.multi_reduction <maxsi>, %23, %cst_4 [1] : vector<8x128xi32> to vector<8xi32>
    %25 = vector.shape_cast %24 : vector<8xi32> to vector<8x1xi32>
    %26 = vector.broadcast %25 : vector<8x1xi32> to vector<8x128xi32>
    %27 = arith.cmpi eq, %23, %26 : vector<8x128xi32>
    %c128_i32_5 = arith.constant 128 : i32
    %28 = vector.broadcast %c128_i32_5 : i32 to vector<8x128xi32>
    %29 = arith.select %27, %7, %28 : vector<8x128xi1>, vector<8x128xi32>
    %cst_6 = arith.constant dense<2147483647> : vector<8xi32>
    %30 = vector.multi_reduction <minsi>, %29, %cst_6 [1] : vector<8x128xi32> to vector<8xi32>
    %31 = vector.shape_cast %30 : vector<8xi32> to vector<8x1xi32>
    %32 = vector.broadcast %31 : vector<8x1xi32> to vector<8x128xi32>
    %33 = arith.cmpi eq, %7, %32 : vector<8x128xi32>
    %c-2147483648_i32_7 = arith.constant -2147483648 : i32
    %34 = vector.broadcast %c-2147483648_i32_7 : i32 to vector<8x128xi32>
    %35 = arith.select %33, %34, %23 : vector<8x128xi1>, vector<8x128xi32>
    %c2_i32 = arith.constant 2 : i32
    %cst_8 = arith.constant dense<-2147483648> : vector<8xi32>
    %36 = vector.multi_reduction <maxsi>, %35, %cst_8 [1] : vector<8x128xi32> to vector<8xi32>
    %37 = vector.shape_cast %36 : vector<8xi32> to vector<8x1xi32>
    %38 = vector.broadcast %37 : vector<8x1xi32> to vector<8x128xi32>
    %39 = arith.cmpi eq, %35, %38 : vector<8x128xi32>
    %c128_i32_9 = arith.constant 128 : i32
    %40 = vector.broadcast %c128_i32_9 : i32 to vector<8x128xi32>
    %41 = arith.select %39, %7, %40 : vector<8x128xi1>, vector<8x128xi32>
    %cst_10 = arith.constant dense<2147483647> : vector<8xi32>
    %42 = vector.multi_reduction <minsi>, %41, %cst_10 [1] : vector<8x128xi32> to vector<8xi32>
    %43 = vector.shape_cast %42 : vector<8xi32> to vector<8x1xi32>
    %44 = vector.broadcast %43 : vector<8x1xi32> to vector<8x128xi32>
    %45 = arith.cmpi eq, %7, %44 : vector<8x128xi32>
    %c-2147483648_i32_11 = arith.constant -2147483648 : i32
    %46 = vector.broadcast %c-2147483648_i32_11 : i32 to vector<8x128xi32>
    %47 = arith.select %45, %46, %35 : vector<8x128xi1>, vector<8x128xi32>
    %c3_i32 = arith.constant 3 : i32
    %cst_12 = arith.constant dense<-2147483648> : vector<8xi32>
    %48 = vector.multi_reduction <maxsi>, %47, %cst_12 [1] : vector<8x128xi32> to vector<8xi32>
    %49 = vector.shape_cast %48 : vector<8xi32> to vector<8x1xi32>
    %50 = vector.broadcast %49 : vector<8x1xi32> to vector<8x128xi32>
    %51 = arith.cmpi eq, %47, %50 : vector<8x128xi32>
    %c128_i32_13 = arith.constant 128 : i32
    %52 = vector.broadcast %c128_i32_13 : i32 to vector<8x128xi32>
    %53 = arith.select %51, %7, %52 : vector<8x128xi1>, vector<8x128xi32>
    %cst_14 = arith.constant dense<2147483647> : vector<8xi32>
    %54 = vector.multi_reduction <minsi>, %53, %cst_14 [1] : vector<8x128xi32> to vector<8xi32>
    %55 = vector.shape_cast %54 : vector<8xi32> to vector<8x1xi32>
    %56 = vector.broadcast %55 : vector<8x1xi32> to vector<8x128xi32>
    %57 = arith.cmpi eq, %7, %56 : vector<8x128xi32>
    %c-2147483648_i32_15 = arith.constant -2147483648 : i32
    %58 = vector.broadcast %c-2147483648_i32_15 : i32 to vector<8x128xi32>
    %59 = arith.select %57, %58, %47 : vector<8x128xi1>, vector<8x128xi32>
    %60 = arith.cmpi ne, %59, %11 : vector<8x128xi32>
    %cst_16 = arith.constant 0.000000e+00 : f32
    %61 = vector.broadcast %cst_16 : f32 to vector<8x128xf32>
    %62 = arith.select %60, %0, %61 : vector<8x128xi1>, vector<8x128xf32>
    %c0_17 = arith.constant 0 : index
    %c0_18 = arith.constant 0 : index
    %63 = vector.load %arg2[%c0_17, %c0_18] : memref<8x128xf32, #tpu.memory_space<vmem>>, vector<8x128xf32>
    tpu.vector_store %arg2[%c0_17, %c0_18], %62 {strides = array<i32>} : memref<8x128xf32, #tpu.memory_space<vmem>>, vector<8x128xf32>,
    return
  }
  func.func @transform_0(%arg0: i32) -> (i32, i32) {
    %c0_i32 = arith.constant 0 : i32
    %c0_i32_0 = arith.constant 0 : i32
    return %arg0, %c0_i32 : i32, i32
  }
  func.func @transform_1(%arg0: i32) -> (i32, i32) {
    %c0_i32 = arith.constant 0 : i32
    %c0_i32_0 = arith.constant 0 : i32
    return %arg0, %c0_i32 : i32, i32
  }
}

</mosaic_0001>

<bundles_post_ra>
// kernel: tpu_custom_call.1
= control target key start
LH: loop header
LB: loop body
LE: loop exit
PB: predicated region body
PF: predicated region fallthrough
CT: control target
= control target key end

     0   :  { %6 = vsyncpa [#allocation3], 0  ;;  %s713_s0 = inlined_call_operand.hbm [shape: f32[16,96], index: 0, kind: input, shape index: {}]   ;;  %s714_s1 = inlined_call_operand.hbm [shape: f32[16,96], index: 1, kind: output, shape index: {}]  }
   0x1   :  { %8 = vsyncpa [#allocation3 + $0x1], 0 }
   0x2   :  { %9 = vsyncpa [#allocation4], 0 }
   0x3   :  { %11 = vsyncpa [#allocation4 + $0x1], 0  ;;  %s524_s6 = smov 0   ;;  %s526_s7 = smov 0  }
   0x4   :  { %s528_s8 = smov 0   ;;  %s530_s9 = smov 0  }
   0x5 LB: > { %s545_s10 = sadd.s32 4294967295, %s510_s9   ;;  %s356_s11 = sadd.s32 4294967294, %s510_s9   ;;  %s510_s9 = sphi %s530_s9, %s729_s9   ;;  %s506_s8 = sphi %s528_s8, %s728_s8   ;;  %s502_s7 = sphi %s526_s7, %s727_s7   ;;  %s498_s6 = sphi %s524_s6, %s726_s6  }
   0x6   : > { %s549_s12 = sadd.s32 1, %s510_s9   ;;  %s24_s13 = sadd.s32 1, %s506_s8 }
   0x7   : > { %s21_s14 = ssub.s32 %s510_s9, %s549_s12  ;;  %p31_p0 = scmp.ne.s32.totalorder %s506_s8, %s502_s7 }
   0x8   : > { %p22_p1 = scmp.eq.s32.totalorder %s21_s14, 0  ;;  %p32_p2 = scmp.eq.s32.totalorder %s510_s9, 0 }
   0x9   : > { %p37_p3 = scmp.ne.s32.totalorder %s502_s7, %s498_s6  ;;  %p38_p4 = scmp.eq.s32.totalorder %s545_s10, 0 }
   0xa   : > { %s561_s15 = scalar_select %p22_p1, %s506_s8, %s24_s13  }
   0xb   : > { %p563_p5 = por %p32_p2, %p31_p0  ;;  %p567_p6 = por %p38_p4, %p37_p3 }
   0xc   : > { %p61_p7 = scmp.eq.s32.totalorder %s545_s10, 1  ;;  %p67_p8 = scmp.eq.s32.totalorder %s356_s11, 1 }
   0xd   : > { %p380_p10 = scmp.lt.s32.totalorder %s510_s9, 2  ;;  %s87_s20 = sand.u32 1, %s506_s8  }
   0xe   : > { %p574_p11 = por %p61_p7, %p31_p0  ;;  %p578_p12 = por %p67_p8, %p37_p3 }
   0xf   : > { %s360_s21 = sshll.u32 %s510_s9, 7  ;;  %s359_s22 = sshll.u32 %s87_s20, 3 }
  0x10   : > { %s718_s18 = scalar_select %p574_p11, 1, 0 }
  0x11   : > { %s719_s19 = scalar_select %p578_p12, 1, 0 }
  0x12   : > { %s587_s25 = scalar_lea.hbm %s713_s0, %s360_s21  ;;  %s91_s26 = scalar_lea.vmem [#allocation2], %s359_s22 }
  0x13   : > { %s98_s27 = sshll.u32 %s91_s26, 4  ;;  %p591_p13 = pnand %p380_p10, %p563_p5  ;;  %s595_s27 = int_to_ptr.vmem [resolvable:$true] %s98_s27 }
  0x14   : > { %s88_s29 = scalar_lea.sflag [#allocation3], %s87_s20  ;;  %s414_s30 = scalar_lea.hbm %s587_s25, 128 }
  0x15   : > { %p415_p2 = scmp.ne.s32.totalorder %s587_s25, %s414_s30  ;;  %p416_p3 = pneg %p591_p13 }
  0x16   : > { %s419_s4 = scalar_lea.hbm %s713_s0, 256  ;;  %p420_p5 = scmp.lt.u32.totalorder %s587_s25, %s713_s0 }
  0x17   : > { %p417_p4 = pnand %p416_p3, %p415_p2  ;;  %p421_p8 = scmp.lt.u32.totalorder %s419_s4, %s414_s30 }
  0x18   : > { %p423_p9 = scmp.lt.u32.totalorder %s414_s30, %s587_s25 }
  0x19   : > { %p418_p7 = pneg %p417_p4  ;;  %p422_p10 = por %p421_p8, %p420_p5 }
  0x1b   : > { %p424_p0 = por %p423_p9, %p422_p10 }
  0x1d   : > { %p425_p1 = pnand %p424_p0, %p418_p7 }
  0x1f   : > { %428 = shalt.err (!%p425_p1)
}
  0x20   : > { %s429_s13 = scalar_lea.vmem %s595_s27, 128  ;;  %s512_s14 = smov [#allocation2]  }
  0x21   : > { %p430_p2 = scmp.ne.s32.totalorder %s595_s27, %s429_s13  ;;  %s434_s16 = sshll.u32 %s512_s14, 4  ;;  %s435_s16 = int_to_ptr.vmem [resolvable:$false] %s434_s16 }
  0x22   : > { %s436_s20 = scalar_lea.vmem %s435_s16, 256  ;;  %p437_p11 = scmp.lt.s32.totalorder %s595_s27, %s435_s16 }
  0x23   : > { %p432_p4 = pnand %p430_p2, %p416_p3  ;;  %p438_p5 = scmp.lt.s32.totalorder %s436_s20, %s429_s13 }
  0x25   : > { %p433_p12 = pneg %p432_p4  ;;  %p439_p8 = por %p438_p5, %p437_p11 }
  0x27   : > { %p440_p9 = pnand %p439_p8, %p433_p12 }
  0x29   : > { %443 = shalt.err (!%p440_p9)
}
  0x2a   : > { %375 = dma.hbm_to_vmem [thread:$0]  (!%p591_p13), %s587_s25, 128, %s595_s27, %s88_s29  }
  0x2b   : > { %p721_p0 = scmp.lt.s32.totalorder %s510_s9, 3  ;;  %p722_p1 = scmp.ge.s32.totalorder %s510_s9, 1 }
  0x2d   : > { %p104_p3 = pnand %p722_p1, %p721_p0 }
  0x2e   : > { %s629_s21 = sand.u32 (!%p104_p3), 1, %s502_s7  }
  0x2f   : > { %107 = sbr.rel (%p104_p3) target bundleno = 2445 (0x98d), region = 24  ;;  %s362_s22 = sshll.u32 (!%p104_p3), %s629_s21, 3 }
  0x30   : > { %s110_s23 = scalar_lea.sflag (!%p104_p3), [#allocation3], %s629_s21  ;;  %s113_s24 = scalar_lea.vmem (!%p104_p3), [#allocation2], %s362_s22 }
  0x36   : > { %489 = dma.done.wait (%p567_p6), %s110_s23, 128  }
  0x37   : > { %491 = vsyncadd (%p567_p6), %s110_s23, 4294967168  ;;  %v137_v0 = vlaneseq  ;;  %v641_v2 = vld [vmem:[%s113_s24] sm:$0xff]  ;;  %s365_s17 = sshll.u32 %s545_s10, 7  ;;  %s131_s25 = scalar_lea.vmem [#allocation5], %s362_s22 }
  0x38   : > { %vm134_vm0 = vcmp.ge.s32.totalorder %v641_v2, 0  ;;  %v135_v3 = vxor.u32 2147483647, %v641_v2  ;;  %s286_s26 = sshll.u32 %s131_s25, 4  ;;  %s668_s29 = scalar_lea.hbm %s714_s1, %s365_s17  ;;  %s670_s26 = int_to_ptr.vmem [resolvable:$true] %s286_s26 }
  0x39   : > { %v639_v1 = vand.u32 127, %v137_v0  ;;  %s273_s10 = scalar_lea.sflag [#allocation4], %s629_s21  ;;  %s444_s30 = scalar_lea.vmem %s670_s26, 128 }
  0x3a   : > { %v136_v4 = vsel %vm134_vm0, %v641_v2, %v135_v3  ;;  %p445_p6 = scmp.ne.s32.totalorder %s670_s26, %s444_s30  ;;  %p723_p11 = scmp.ne.s32.totalorder %s718_s18, 0 }
  0x3b   : > { %vm139_vm1 = vcmp.lt.s32.totalorder %v639_v1, 96  ;;  %s513_s2 = smov [#allocation5]  }
  0x3c   : > { %v647_v5 = vsel %vm139_vm1, %v136_v4, 2147483648  ;;  %p446_p12 = pnand %p445_p6, %p723_p11  ;;  %s448_s3 = sshll.u32 %s513_s2, 4  ;;  %s449_s3 = int_to_ptr.vmem [resolvable:$false] %s448_s3 }
  0x3d   : > { %v142_v6 = vshra.s32 %v647_v5, 16  ;;  %v141_v8 = vand.u32 65535, %v647_v5  ;;  %s450_s4 = scalar_lea.vmem %s449_s3, 256  ;;  %p451_p7 = scmp.lt.s32.totalorder %s670_s26, %s449_s3 }
  0x3e   : > { %p447_p13 = pneg %p446_p12  ;;  %p452_p10 = scmp.lt.s32.totalorder %s450_s4, %s444_s30 }
  0x3f   : > { %v144_v7 = vcvt.s32.f32 %v142_v6  ;;  %v143_v9 = vcvt.s32.f32 %v141_v8 }
  0x40   : > { %p453_p2 = por %p452_p10, %p451_p7 }
  0x41   : > { %145 = vmax.xlane.f32.xlu0 %v144_v7 }
  0x42   : > { %p454_p4 = pnand %p453_p2, %p447_p13 }
  0xce   : > { %v146_v10 = vpop.xlane.xlu0 %145 }
  0xcf   : > { %vm147_vm2 = vcmp.eq.f32.partialorder %v144_v7, %v146_v10  ;;  %v152_v12 = vcvt.f32.s32 %v146_v10 }
  0xd0   : > { %v148_v11 = vsel %vm147_vm2, %v143_v9, -inf }
  0xd1   : > { %149 = vmax.xlane.f32.xlu0 %v148_v11  ;;  %v153_v14 = vshll.u32 %v152_v12, 16 }
 0x15e   : > { %v150_v13 = vpop.xlane.xlu0 %149 }
 0x15f   : > { %v151_v15 = vcvt.f32.s32 %v150_v13 }
 0x161   : > { %v154_v16 = vadd.s32 %v153_v14, %v151_v15 }
 0x163   : > { %vm155_vm3 = vcmp.eq.s32.totalorder %v647_v5, %v154_v16 }
 0x164   : > { %v156_v17 = vsel %vm155_vm3, %v639_v1, 128 }
 0x165   : > { %v158_v18 = vshra.s32 %v156_v17, 16  ;;  %v157_v20 = vand.u32 65535, %v156_v17 }
 0x167   : > { %v160_v19 = vcvt.s32.f32 %v158_v18  ;;  %v159_v22 = vcvt.s32.f32 %v157_v20 }
 0x169   : > { %161 = vmin.xlane.f32.xlu1 %v160_v19 }
 0x1f6   : > { %v162_v21 = vpop.xlane.xlu1 %161 }
 0x1f7   : > { %vm163_vm4 = vcmp.eq.f32.partialorder %v160_v19, %v162_v21  ;;  %v168_v24 = vcvt.f32.s32 %v162_v21 }
 0x1f8   : > { %v164_v23 = vsel %vm163_vm4, %v159_v22, inf }
 0x1f9   : > { %165 = vmin.xlane.f32.xlu1 %v164_v23  ;;  %v169_v26 = vshll.u32 %v168_v24, 16 }
 0x286   : > { %v166_v25 = vpop.xlane.xlu1 %165 }
 0x287   : > { %v167_v27 = vcvt.f32.s32 %v166_v25 }
 0x289   : > { %v170_v28 = vadd.s32 %v169_v26, %v167_v27 }
 0x28b   : > { %vm171_vm5 = vcmp.eq.s32.totalorder %v639_v1, %v170_v28 }
 0x28c   : > { %v172_v29 = vsel %vm171_vm5, 2147483648, %v647_v5 }
 0x28d   : > { %v174_v30 = vshra.s32 %v172_v29, 16  ;;  %v173_v32 = vand.u32 65535, %v172_v29 }
 0x28f   : > { %v176_v31 = vcvt.s32.f32 %v174_v30  ;;  %v175_v34 = vcvt.s32.f32 %v173_v32 }
 0x291   : > { %177 = vmax.xlane.f32.xlu0 %v176_v31 }
 0x31e   : > { %v178_v33 = vpop.xlane.xlu0 %177 }
 0x31f   : > { %vm179_vm6 = vcmp.eq.f32.partialorder %v176_v31, %v178_v33  ;;  %v184_v36 = vcvt.f32.s32 %v178_v33 }
 0x320   : > { %v180_v35 = vsel %vm179_vm6, %v175_v34, -inf }
 0x321   : > { %181 = vmax.xlane.f32.xlu1 %v180_v35  ;;  %v185_v38 = vshll.u32 %v184_v36, 16 }
 0x3ae   : > { %v182_v37 = vpop.xlane.xlu1 %181 }
 0x3af   : > { %v183_v39 = vcvt.f32.s32 %v182_v37 }
 0x3b1   : > { %v186_v40 = vadd.s32 %v185_v38, %v183_v39 }
 0x3b3   : > { %vm187_vm7 = vcmp.eq.s32.totalorder %v172_v29, %v186_v40 }
 0x3b4   : > { %v188_v41 = vsel %vm187_vm7, %v639_v1, 128 }
 0x3b5   : > { %v190_v42 = vshra.s32 %v188_v41, 16  ;;  %v189_v44 = vand.u32 65535, %v188_v41 }
 0x3b7   : > { %v192_v43 = vcvt.s32.f32 %v190_v42  ;;  %v191_v46 = vcvt.s32.f32 %v189_v44 }
 0x3b9   : > { %193 = vmin.xlane.f32.xlu0 %v192_v43 }
 0x446   : > { %v194_v45 = vpop.xlane.xlu0 %193 }
 0x447   : > { %vm195_vm8 = vcmp.eq.f32.partialorder %v192_v43, %v194_v45  ;;  %v200_v48 = vcvt.f32.s32 %v194_v45 }
 0x448   : > { %v196_v47 = vsel %vm195_vm8, %v191_v46, inf }
 0x449   : > { %197 = vmin.xlane.f32.xlu1 %v196_v47  ;;  %v201_v50 = vshll.u32 %v200_v48, 16 }
 0x4d6   : > { %v198_v49 = vpop.xlane.xlu1 %197 }
 0x4d7   : > { %v199_v51 = vcvt.f32.s32 %v198_v49 }
 0x4d9   : > { %v202_v52 = vadd.s32 %v201_v50, %v199_v51 }
 0x4db   : > { %vm203_vm9 = vcmp.eq.s32.totalorder %v639_v1, %v202_v52 }
 0x4dc   : > { %v204_v53 = vsel %vm203_vm9, 2147483648, %v172_v29 }
 0x4dd   : > { %v206_v54 = vshra.s32 %v204_v53, 16  ;;  %v205_v56 = vand.u32 65535, %v204_v53 }
 0x4df   : > { %v208_v55 = vcvt.s32.f32 %v206_v54  ;;  %v207_v58 = vcvt.s32.f32 %v205_v56 }
 0x4e1   : > { %209 = vmax.xlane.f32.xlu0 %v208_v55 }
 0x56e   : > { %v210_v57 = vpop.xlane.xlu0 %209 }
 0x56f   : > { %vm211_vm10 = vcmp.eq.f32.partialorder %v208_v55, %v210_v57  ;;  %v216_v60 = vcvt.f32.s32 %v210_v57 }
 0x570   : > { %v212_v59 = vsel %vm211_vm10, %v207_v58, -inf }
 0x571   : > { %213 = vmax.xlane.f32.xlu1 %v212_v59  ;;  %v217_v62 = vshll.u32 %v216_v60, 16 }
 0x5fe   : > { %v214_v61 = vpop.xlane.xlu1 %213 }
 0x5ff   : > { %v215_v63 = vcvt.f32.s32 %v214_v61 }
 0x601   : > { %v218_v0 = vadd.s32 %v217_v62, %v215_v63 }
 0x603   : > { %vm219_vm11 = vcmp.eq.s32.totalorder %v204_v53, %v218_v0 }
 0x604   : > { %v220_v3 = vsel %vm219_vm11, %v639_v1, 128 }
 0x605   : > { %v222_v4 = vshra.s32 %v220_v3, 16  ;;  %v221_v7 = vand.u32 65535, %v220_v3 }
 0x607   : > { %v224_v6 = vcvt.s32.f32 %v222_v4  ;;  %v223_v9 = vcvt.s32.f32 %v221_v7 }
 0x609   : > { %225 = vmin.xlane.f32.xlu0 %v224_v6 }
 0x696   : > { %v226_v8 = vpop.xlane.xlu0 %225 }
 0x697   : > { %vm227_vm12 = vcmp.eq.f32.partialorder %v224_v6, %v226_v8  ;;  %v232_v11 = vcvt.f32.s32 %v226_v8 }
 0x698   : > { %v228_v10 = vsel %vm227_vm12, %v223_v9, inf }
 0x699   : > { %229 = vmin.xlane.f32.xlu1 %v228_v10  ;;  %v233_v13 = vshll.u32 %v232_v11, 16 }
 0x726   : > { %v230_v12 = vpop.xlane.xlu1 %229 }
 0x727   : > { %v231_v14 = vcvt.f32.s32 %v230_v12 }
 0x729   : > { %v234_v15 = vadd.s32 %v233_v13, %v231_v14 }
 0x72b   : > { %vm235_vm13 = vcmp.eq.s32.totalorder %v639_v1, %v234_v15 }
 0x72c   : > { %v236_v16 = vsel %vm235_vm13, 2147483648, %v204_v53 }
 0x72d   : > { %v238_v17 = vshra.s32 %v236_v16, 16  ;;  %v237_v19 = vand.u32 65535, %v236_v16 }
 0x72f   : > { %v240_v18 = vcvt.s32.f32 %v238_v17  ;;  %v239_v21 = vcvt.s32.f32 %v237_v19 }
 0x731   : > { %241 = vmax.xlane.f32.xlu0 %v240_v18 }
 0x7be   : > { %v242_v20 = vpop.xlane.xlu0 %241 }
 0x7bf   : > { %vm243_vm14 = vcmp.eq.f32.partialorder %v240_v18, %v242_v20  ;;  %v248_v23 = vcvt.f32.s32 %v242_v20 }
 0x7c0   : > { %v244_v22 = vsel %vm243_vm14, %v239_v21, -inf }
 0x7c1   : > { %245 = vmax.xlane.f32.xlu1 %v244_v22  ;;  %v249_v25 = vshll.u32 %v248_v23, 16 }
 0x84e   : > { %v246_v24 = vpop.xlane.xlu1 %245 }
 0x84f   : > { %v247_v26 = vcvt.f32.s32 %v246_v24 }
 0x851   : > { %v250_v27 = vadd.s32 %v249_v25, %v247_v26 }
 0x853   : > { %vm251_vm15 = vcmp.eq.s32.totalorder %v236_v16, %v250_v27 }
 0x854   : > { %v252_v28 = vsel %vm251_vm15, %v639_v1, 128 }
 0x855   : > { %v254_v29 = vshra.s32 %v252_v28, 16  ;;  %v253_v31 = vand.u32 65535, %v252_v28 }
 0x857   : > { %v256_v30 = vcvt.s32.f32 %v254_v29  ;;  %v255_v33 = vcvt.s32.f32 %v253_v31 }
 0x859   : > { %257 = vmin.xlane.f32.xlu0 %v256_v30 }
 0x8e6   : > { %v258_v32 = vpop.xlane.xlu0 %257 }
 0x8e7   : > { %vm259_vm0 = vcmp.eq.f32.partialorder %v256_v30, %v258_v32  ;;  %v264_v35 = vcvt.f32.s32 %v258_v32 }
 0x8e8   : > { %v260_v34 = vsel %vm259_vm0, %v255_v33, inf }
 0x8e9   : > { %261 = vmin.xlane.f32.xlu1 %v260_v34  ;;  %v265_v37 = vshll.u32 %v264_v35, 16 }
 0x976   : > { %v262_v36 = vpop.xlane.xlu1 %261 }
 0x977   : > { %v263_v38 = vcvt.f32.s32 %v262_v36 }
 0x979   : > { %v266_v39 = vadd.s32 %v265_v37, %v263_v38 }
 0x97b   : > { %vm267_vm1 = vcmp.eq.s32.totalorder %v639_v1, %v266_v39 }
 0x97c   : > { %v268_v40 = vsel %vm267_vm1, 2147483648, %v236_v16 }
 0x97d   : > { %vm269_vm2 = vcmp.ne.s32.totalorder %v268_v40, %v647_v5 }
 0x97e   : > { %v270_v41 = vsel %vm269_vm2, %v641_v2, 0.0 }
 0x97f   : > { %271 = vst [vmem:[%s131_s25] sm:$0xff] %v270_v41 }
 0x980   : > { %457 = shalt.err (!%p454_p4)
}
 0x981   : > { %s458_s5 = scalar_lea.hbm %s668_s29, 128  ;;  %s462_s14 = scalar_lea.hbm %s714_s1, 256 }
 0x982   : > { %p459_p5 = scmp.ne.s32.totalorder %s668_s29, %s458_s5  ;;  %p463_p0 = scmp.lt.u32.totalorder %s668_s29, %s714_s1 }
 0x983   : > { %p464_p1 = scmp.lt.u32.totalorder %s462_s14, %s458_s5  ;;  %p466_p6 = scmp.lt.u32.totalorder %s458_s5, %s668_s29 }
 0x984   : > { %p460_p8 = pnand %p459_p5, %p723_p11 }
 0x985   : > { %p465_p3 = por %p464_p1, %p463_p0 }
 0x986   : > { %p461_p9 = pneg %p460_p8 }
 0x987   : > { %p467_p12 = por %p466_p6, %p465_p3 }
 0x989   : > { %p468_p13 = pnand %p467_p12, %p461_p9 }
 0x98b   : > { %471 = shalt.err (!%p468_p13)
}
 0x98c   : > { %370 = dma.vmem_to_hbm [thread:$0]  (%p723_p11), %s670_s26, 128, %s668_s29, %s273_s10  }
 0x98d PF: > { %s298_s21 = sand.u32 1, %s498_s6   ;;  %p724_p7 = scmp.ne.s32.totalorder %s719_s19, 0 }
 0x98e   : > { %p725_p10 = scmp.ge.s32.totalorder %s510_s9, 2  ;;  %s299_s22 = scalar_lea.sflag [#allocation4], %s298_s21 }
 0x990   : > { %p377_p2 = pnand %p725_p10, %p724_p7 }
 0x992   : > { %493 = dma.done.wait (!%p377_p2), %s299_s22, 128  }
 0x993   : > { %495 = vsyncadd (!%p377_p2), %s299_s22, 4294967168  ;;  %p14_p4 = scmp.ge.s32.totalorder %s549_s12, 4   ;;  %s726_s6 = smov %s502_s7 }
 0x994   : > { %s727_s7 = smov %s506_s8  ;;  %s728_s8 = smov %s561_s15 }
 0x995   : > { %s729_s9 = smov %s549_s12  ;;  %16 = sbr.rel (!%p14_p4) target bundleno = 5 (0x5), region = 69 }
 0x99c   :  { %304 = vsyncpa [#allocation3], 1 }
 0x99d   :  { %306 = vsyncpa [#allocation3 + $0x1], 1 }
 0x99e   :  { %307 = vsyncpa [#allocation4], 1 }
 0x99f   :  { %309 = vsyncpa [#allocation4 + $0x1], 1 }

</bundles_post_ra>
